<compile_context>
chip_gen: v7x
topology: tpu7x:2x2x1
jax: 0.10.0
libtpu: 0.0.40
codegen_flags: <defaults>
</compile_context>

<pallas_src>
import functools
import math

import jax
import jax.numpy as jnp
from jax.experimental import pallas as pl
from jax.experimental.pallas import tpu as pltpu


# ----------------------------------------------------------------------------
# Kernel 1: fused QKV projection   y = x @ Wqkv + bqkv,  row-tiled over (B*S)
# ----------------------------------------------------------------------------
def _qkv_linear_kernel(x_ref, w_ref, b_ref, o_ref):
    # x_ref: (TM, Din) f32, w_ref: (Din, 3D) bf16, b_ref: (1, 3D) f32,
    # o_ref: (TM, 3D) bf16
    x = x_ref[...].astype(w_ref.dtype)
    y = jnp.dot(x, w_ref[...], preferred_element_type=jnp.float32) + b_ref[...]
    o_ref[...] = y.astype(o_ref.dtype)


def _pick_row_tile(m):
    for t in (512, 256, 128, 64, 32, 16, 8):
        if m % t == 0:
            return t
    return m  # small / ragged M: single full-extent block


def fused_qkv_linear(x, w, b, out_dtype=jnp.bfloat16):
    # x: (B, S, Din), w: (Din, 3D) (already compute dtype), b: (1, 3D) f32
    B, S, Din = x.shape
    Dout = w.shape[1]
    M = B * S
    tm = _pick_row_tile(M)
    x2 = x.reshape(M, Din)
    y = pl.pallas_call(
        _qkv_linear_kernel,
        out_shape=jax.ShapeDtypeStruct((M, Dout), out_dtype),
        grid=(M // tm,),
        in_specs=[
            pl.BlockSpec((tm, Din), lambda i: (i, 0)),
            pl.BlockSpec((Din, Dout), lambda i: (0, 0)),  # resident weight
            pl.BlockSpec((1, Dout), lambda i: (0, 0)),    # resident bias
        ],
        out_specs=pl.BlockSpec((tm, Dout), lambda i: (i, 0)),
        compiler_params=pltpu.CompilerParams(
            dimension_semantics=("parallel",),
            vmem_limit_bytes=32 * 1024 * 1024),
    )(x2, w, b)
    return y.reshape(B, S, Dout)


# ----------------------------------------------------------------------------
# Kernel 2: bi-directional cross attention, all heads per grid step, grid=(B,)
# ----------------------------------------------------------------------------
def _biattn_kernel(qkv1_ref, qkv2_ref, m1_ref, m2_ref, c1_ref, c2_ref, *,
                   num_heads, head_dim):
    # qkv1_ref: (1, S1, 3D) bf16   qkv2_ref: (1, S2, 3D) bf16
    # m1_ref:   (1, 1, S1)  f32    m2_ref:   (1, 1, S2)  f32
    # c1_ref:   (1, S2, D)  f32    c2_ref:   (1, S1, D)  f32
    D = num_heads * head_dim
    m1 = m1_ref[0]  # (1, S1) -> broadcasts over query rows
    m2 = m2_ref[0]  # (1, S2)

    def one_direction(q_ref, kv_ref, mask, out_ref):
        # Queries from q_ref's stream, keys/values from kv_ref's stream.
        # Scale 1/sqrt(head_dim) is already folded into the query projection.
        ctxs = []
        for h in range(num_heads):
            q_sl = slice(h * head_dim, (h + 1) * head_dim)
            k_sl = slice(D + h * head_dim, D + (h + 1) * head_dim)
            v_sl = slice(2 * D + h * head_dim, 2 * D + (h + 1) * head_dim)
            qh = q_ref[0, :, q_sl]    # (Sq, dh) bf16
            kh = kv_ref[0, :, k_sl]   # (Sk, dh) bf16
            vh = kv_ref[0, :, v_sl]   # (Sk, dh) bf16
            s = jnp.einsum("qd,kd->qk", qh, kh,
                           preferred_element_type=jnp.float32)
            s = s + mask
            s = s - jnp.max(s, axis=-1, keepdims=True)
            p = jnp.exp(s)
            p = p * pl.reciprocal(jnp.sum(p, axis=-1, keepdims=True),
                                  approx=True)
            # TODO(synk): attention-prob dropout is identity in eval mode;
            # training-time stochastic dropout (pltpu.prng_*) not implemented.
            ctxs.append(jnp.einsum("qk,kd->qd", p.astype(vh.dtype), vh,
                                   preferred_element_type=jnp.float32))
        # Single lane-dense store of all heads: (Sq, H*dh)
        out_ref[0] = jnp.concatenate(ctxs, axis=-1).astype(out_ref.dtype)

    # context1: stream-2 (text) queries attend to stream-1 (visual) keys/values
    one_direction(qkv2_ref, qkv1_ref, m1, c1_ref)
    # context2: stream-1 (visual) queries attend to stream-2 (text) keys/values
    one_direction(qkv1_ref, qkv2_ref, m2, c2_ref)


def bi_attention(qkv1, qkv2, mask1, mask2, num_heads, head_dim,
                 out_dtype=jnp.float32):
    # qkv1: (B, S1, 3D), qkv2: (B, S2, 3D), masks: (B, 1, Sk) additive f32
    B, S1, _ = qkv1.shape
    _, S2, _ = qkv2.shape
    D = num_heads * head_dim
    kern = functools.partial(_biattn_kernel, num_heads=num_heads,
                             head_dim=head_dim)
    return pl.pallas_call(
        kern,
        out_shape=(jax.ShapeDtypeStruct((B, S2, D), out_dtype),
                   jax.ShapeDtypeStruct((B, S1, D), out_dtype)),
        grid=(B,),
        in_specs=[
            pl.BlockSpec((1, S1, 3 * D), lambda b: (b, 0, 0)),
            pl.BlockSpec((1, S2, 3 * D), lambda b: (b, 0, 0)),
            pl.BlockSpec((1, 1, S1), lambda b: (b, 0, 0)),
            pl.BlockSpec((1, 1, S2), lambda b: (b, 0, 0)),
        ],
        out_specs=(
            pl.BlockSpec((1, S2, D), lambda b: (b, 0, 0)),
            pl.BlockSpec((1, S1, D), lambda b: (b, 0, 0)),
        ),
        compiler_params=pltpu.CompilerParams(
            dimension_semantics=("parallel",),
            vmem_limit_bytes=32 * 1024 * 1024),
    )(qkv1, qkv2, mask1, mask2)


# ----------------------------------------------------------------------------
# BertBiAttention forward
# ----------------------------------------------------------------------------
def bert_bi_attention(params, input_tensor1, attention_mask1,
                      input_tensor2, attention_mask2,
                      num_heads, head_dim, visualization=False,
                      compute_dtype=jnp.bfloat16):
    D = num_heads * head_dim
    scale = 1.0 / math.sqrt(head_dim)

    # Fused per-stream QKV weights; fold score scale into the query projection.
    wqkv1 = jnp.concatenate(
        [params["wq1"] * scale, params["wk1"], params["wv1"]],
        axis=1).astype(compute_dtype)
    bqkv1 = jnp.concatenate(
        [params["bq1"] * scale, params["bk1"], params["bv1"]], axis=1)
    wqkv2 = jnp.concatenate(
        [params["wq2"] * scale, params["wk2"], params["wv2"]],
        axis=1).astype(compute_dtype)
    bqkv2 = jnp.concatenate(
        [params["bq2"] * scale, params["bk2"], params["bv2"]], axis=1)

    qkv1 = fused_qkv_linear(input_tensor1, wqkv1, bqkv1,
                            out_dtype=compute_dtype)  # (B, S1, 3D)
    qkv2 = fused_qkv_linear(input_tensor2, wqkv2, bqkv2,
                            out_dtype=compute_dtype)  # (B, S2, 3D)

    B = input_tensor1.shape[0]
    S1 = input_tensor1.shape[1]
    S2 = input_tensor2.shape[1]
    m1 = attention_mask1.reshape(B, 1, S1).astype(jnp.float32)
    m2 = attention_mask2.reshape(B, 1, S2).astype(jnp.float32)

    ctx1, ctx2 = bi_attention(qkv1, qkv2, m1, m2, num_heads, head_dim)

    # TODO(synk): visualization=True (returning attention_probs) not exported
    # from the kernel; returns None like visualization=False.
    attn_data = None
    return ctx1, ctx2, attn_data


# ----------------------------------------------------------------------------
# Pure-JAX f32 reference for a sanity check
# ----------------------------------------------------------------------------
def reference(params, x1, m1, x2, m2, num_heads, head_dim):
    def lin(x, w, b):
        return jnp.einsum("bsd,de->bse", x, w) + b

    def tfs(x):
        B, S, _ = x.shape
        return x.reshape(B, S, num_heads, head_dim).transpose(0, 2, 1, 3)

    def merge(x):
        B, H, S, dh = x.shape
        return x.transpose(0, 2, 1, 3).reshape(B, S, H * dh)

    q1, k1, v1 = (tfs(lin(x1, params[a], params[b]))
                  for a, b in (("wq1", "bq1"), ("wk1", "bk1"), ("wv1", "bv1")))
    q2, k2, v2 = (tfs(lin(x2, params[a], params[b]))
                  for a, b in (("wq2", "bq2"), ("wk2", "bk2"), ("wv2", "bv2")))

    s1 = jnp.einsum("bhqd,bhkd->bhqk", q2, k1) / math.sqrt(head_dim) + m1
    p1 = jax.nn.softmax(s1, axis=-1)
    c1 = merge(jnp.einsum("bhqk,bhkd->bhqd", p1, v1))

    s2 = jnp.einsum("bhqd,bhkd->bhqk", q1, k2) / math.sqrt(head_dim) + m2
    p2 = jax.nn.softmax(s2, axis=-1)
    c2 = merge(jnp.einsum("bhqk,bhkd->bhqd", p2, v2))
    return c1, c2


if __name__ == "__main__":
    # Config (small, synthetic): bi_hidden=32, heads=4 -> head_dim=8
    B, S1, S2 = 2, 16, 8
    V_HIDDEN, T_HIDDEN, BI_HIDDEN, NUM_HEADS = 32, 32, 32, 4
    HEAD_DIM = BI_HIDDEN // NUM_HEADS

    key = jax.random.PRNGKey(0)
    keys = jax.random.split(key, 16)

    def w(k, din, dout):
        return jax.random.normal(k, (din, dout), jnp.float32) * 0.02

    params = {
        "wq1": w(keys[0], V_HIDDEN, BI_HIDDEN), "bq1": jnp.zeros((1, BI_HIDDEN), jnp.float32),
        "wk1": w(keys[1], V_HIDDEN, BI_HIDDEN), "bk1": jnp.full((1, BI_HIDDEN), 0.01, jnp.float32),
        "wv1": w(keys[2], V_HIDDEN, BI_HIDDEN), "bv1": jnp.full((1, BI_HIDDEN), -0.01, jnp.float32),
        "wq2": w(keys[3], T_HIDDEN, BI_HIDDEN), "bq2": jnp.zeros((1, BI_HIDDEN), jnp.float32),
        "wk2": w(keys[4], T_HIDDEN, BI_HIDDEN), "bk2": jnp.full((1, BI_HIDDEN), 0.02, jnp.float32),
        "wv2": w(keys[5], T_HIDDEN, BI_HIDDEN), "bv2": jnp.full((1, BI_HIDDEN), -0.02, jnp.float32),
    }

    input_tensor1 = jax.random.normal(keys[6], (B, S1, V_HIDDEN), jnp.float32)  # visual
    input_tensor2 = jax.random.normal(keys[7], (B, S2, T_HIDDEN), jnp.float32)  # text

    # Additive extended attention masks (0 keep, -10000 masked), (B,1,1,key_len)
    keep1 = (jax.random.uniform(keys[8], (B, S1)) > 0.2).astype(jnp.float32)
    keep2 = (jax.random.uniform(keys[9], (B, S2)) > 0.2).astype(jnp.float32)
    attention_mask1 = ((1.0 - keep1) * -10000.0)[:, None, None, :]
    attention_mask2 = ((1.0 - keep2) * -10000.0)[:, None, None, :]

    ctx1, ctx2, attn_data = bert_bi_attention(
        params, input_tensor1, attention_mask1, input_tensor2, attention_mask2,
        NUM_HEADS, HEAD_DIM)
    jax.block_until_ready((ctx1, ctx2))

    ref1, ref2 = reference(params, input_tensor1, attention_mask1,
                           input_tensor2, attention_mask2, NUM_HEADS, HEAD_DIM)
    assert ctx1.shape == (B, S2, BI_HIDDEN)
    assert ctx2.shape == (B, S1, BI_HIDDEN)
    # bf16 MXU inputs + approx reciprocal -> looser tolerance than pure-f32.
    assert jnp.max(jnp.abs(ctx1 - ref1)) < 2e-2
    assert jnp.max(jnp.abs(ctx2 - ref2)) < 2e-2

    print("KERNEL_OK")
</pallas_src>

<mosaic_0001>
module attributes {stable_mosaic.version = 11 : i64} {
  func.func @_qkv_linear_kernel(%arg0: i32, %arg1: memref<32x32xf32, #tpu.memory_space<vmem>>, %arg2: memref<32x96xbf16, #tpu.memory_space<vmem>>, %arg3: memref<1x96xf32, #tpu.memory_space<vmem>>, %arg4: memref<32x96xbf16, #tpu.memory_space<vmem>>) attributes {dimension_semantics = [#tpu.dimension_semantics<parallel>], iteration_bounds = array<i64: 1>, scalar_prefetch = 0 : i64, scratch_operands = 0 : i64, tpu.core_type = #tpu.core_type<tc>, window_params = [{transform_indices = @transform_0, window_bounds = array<i64: 32, 32>}, {pipeline_mode = #tpu.pipeline_mode<synchronous>, transform_indices = @transform_1, window_bounds = array<i64: 32, 96>}, {pipeline_mode = #tpu.pipeline_mode<synchronous>, transform_indices = @transform_2, window_bounds = array<i64: 1, 96>}, {transform_indices = @transform_3, window_bounds = array<i64: 32, 96>}]} {
    %c0 = arith.constant 0 : index
    %c0_0 = arith.constant 0 : index
    %0 = vector.load %arg1[%c0, %c0_0] : memref<32x32xf32, #tpu.memory_space<vmem>>, vector<32x32xf32>
    %1 = arith.truncf %0 : vector<32x32xf32> to vector<32x32xbf16>
    %c0_1 = arith.constant 0 : index
    %c0_2 = arith.constant 0 : index
    %2 = vector.load %arg2[%c0_1, %c0_2] : memref<32x96xbf16, #tpu.memory_space<vmem>>, vector<32x96xbf16>
    %cst = arith.constant dense<0.000000e+00> : vector<32x96xf32>
    %3 = tpu.matmul %1, %2, %cst {dimension_numbers = #tpu.dot_dimension_numbers<[1], [0], [0], [1], [0, 0, 1, 1], [], []>} : vector<32x32xbf16>, vector<32x96xbf16>, vector<32x96xf32> -> vector<32x96xf32>
    %c0_3 = arith.constant 0 : index
    %c0_4 = arith.constant 0 : index
    %4 = vector.load %arg3[%c0_3, %c0_4] : memref<1x96xf32, #tpu.memory_space<vmem>>, vector<1x96xf32>
    %5 = vector.broadcast %4 : vector<1x96xf32> to vector<32x96xf32>
    %6 = arith.addf %3, %5 : vector<32x96xf32>
    %7 = arith.truncf %6 : vector<32x96xf32> to vector<32x96xbf16>
    %c0_5 = arith.constant 0 : index
    %c0_6 = arith.constant 0 : index
    %8 = vector.load %arg4[%c0_5, %c0_6] : memref<32x96xbf16, #tpu.memory_space<vmem>>, vector<32x96xbf16>
    tpu.vector_store %arg4[%c0_5, %c0_6], %7 {strides = array<i32>} : memref<32x96xbf16, #tpu.memory_space<vmem>>, vector<32x96xbf16>,
    return
  }
  func.func @transform_0(%arg0: i32) -> (i32, i32) {
    %c0_i32 = arith.constant 0 : i32
    %c0_i32_0 = arith.constant 0 : i32
    return %arg0, %c0_i32 : i32, i32
  }
  func.func @transform_1(%arg0: i32) -> (i32, i32) {
    %c0_i32 = arith.constant 0 : i32
    %c0_i32_0 = arith.constant 0 : i32
    %c0_i32_1 = arith.constant 0 : i32
    return %c0_i32, %c0_i32_0 : i32, i32
  }
  func.func @transform_2(%arg0: i32) -> (i32, i32) {
    %c0_i32 = arith.constant 0 : i32
    %c0_i32_0 = arith.constant 0 : i32
    %c0_i32_1 = arith.constant 0 : i32
    return %c0_i32, %c0_i32_0 : i32, i32
  }
  func.func @transform_3(%arg0: i32) -> (i32, i32) {
    %c0_i32 = arith.constant 0 : i32
    %c0_i32_0 = arith.constant 0 : i32
    return %arg0, %c0_i32 : i32, i32
  }
}

</mosaic_0001>

<bundles_post_ra>
// kernel: tpu_custom_call.1
= control target key start
LH: loop header
LB: loop body
LE: loop exit
PB: predicated region body
PF: predicated region fallthrough
CT: control target
= control target key end

     0   :  { %8 = vsyncpa [#allocation3], 0  ;;  %s350_s0 = inlined_call_operand.hbm [shape: f32[32,32], index: 0, kind: input, shape index: {}]   ;;  %s351_s1 = inlined_call_operand.hbm [shape: bf16[32,96], index: 1, kind: input, shape index: {}]   ;;  %s352_s2 = inlined_call_operand.vmem [shape: f32[1,96], index: 2, kind: input, shape index: {}]   ;;  %s353_s3 = inlined_call_operand.hbm [shape: bf16[32,96], index: 3, kind: output, shape index: {}]  }
   0x1   :  { %9 = vsyncpa [#allocation6], 0 }
   0x2   :  { %10 = vsyncpa [#allocation4], 0  ;;  %s274_s12 = smov [#allocation2]   ;;  %s202_s16 = scalar_lea.hbm %s350_s0, 512 }
   0x3   :  { %s16_s13 = sshll.u32 %s274_s12, 4  ;;  %p203_p0 = scmp.ne.s32.totalorder %s350_s0, %s202_s16  ;;  %s17_s13 = int_to_ptr.vmem [resolvable:$true] %s16_s13 }
   0x4   :  { %p206_p1 = scmp.lt.u32.totalorder %s202_s16, %s350_s0 }
   0x6   :  { %p208_p2 = pnand %p206_p1, %p203_p0 }
   0x8   :  { %211 = shalt.err (!%p208_p2)
}
   0x9   :  { %s212_s21 = scalar_lea.vmem %s17_s13, 512  ;;  %p217_p4 = scmp.lt.s32.totalorder %s17_s13, %s17_s13 }
   0xa   :  { %p213_p3 = scmp.ne.s32.totalorder %s17_s13, %s212_s21  ;;  %p218_p5 = scmp.lt.s32.totalorder %s212_s21, %s212_s21 }
   0xc   :  { %p219_p6 = por %p218_p5, %p217_p4 }
   0xe   :  { %p220_p7 = pnand %p219_p6, %p213_p3 }
  0x10   :  { %223 = shalt.err (!%p220_p7)
}
  0x11   :  { %s275_s22 = smov 128   ;;  %s276_s23 = smov 8  }
  0x12   :  { %22 = dma.hbm_to_vmem [thread:$0]  %s350_s0, 512, %s17_s13, [#allocation3], %s275_s22, %s275_s22, %s276_s23  }
  0x13   :  { %s277_s26 = smov [#allocation5]   ;;  %s224_s30 = scalar_lea.hbm %s351_s1, 256 }
  0x14   :  { %s28_s27 = sshll.u32 %s277_s26, 4  ;;  %p225_p8 = scmp.ne.s32.totalorder %s351_s1, %s224_s30  ;;  %s29_s27 = int_to_ptr.vmem [resolvable:$true] %s28_s27 }
  0x15   :  { %p228_p9 = scmp.lt.u32.totalorder %s224_s30, %s351_s1 }
  0x17   :  { %p230_p10 = pnand %p228_p9, %p225_p8 }
  0x19   :  { %233 = shalt.err (!%p230_p10)
}
  0x1a   :  { %s234_s8 = scalar_lea.vmem %s29_s27, 256  ;;  %p239_p12 = scmp.lt.s32.totalorder %s29_s27, %s29_s27 }
  0x1b   :  { %p235_p11 = scmp.ne.s32.totalorder %s29_s27, %s234_s8  ;;  %p240_p13 = scmp.lt.s32.totalorder %s234_s8, %s234_s8 }
  0x1d   :  { %p241_p0 = por %p240_p13, %p239_p12 }
  0x1f   :  { %p242_p1 = pnand %p241_p0, %p235_p11 }
  0x21   :  { %245 = shalt.err (!%p242_p1)
}
  0x22   :  { %s278_s0 = smov 64   ;;  %s279_s9 = smov 4  }
  0x23   :  { %34 = dma.hbm_to_vmem [thread:$0]  %s351_s1, 256, %s29_s27, [#allocation6], %s278_s0, %s278_s0, %s279_s9  }
  0x24   :  { %268 = dma.done.wait [#allocation3], 512  }
  0x25   :  { %269 = vsyncadd [#allocation3], 4294966784 }
  0x26   :  { %270 = dma.done.wait [#allocation6], 256  }
  0x27   :  { %271 = vsyncadd [#allocation6], 4294967040  ;;  %v200_v0 = vld [vmem:[#allocation5] sm:$0xff]   ;;  %v201_v1 = vld [vmem:[#allocation5 + $0x8] sm:$0xff]   ;;  %vm73_vm0 = vcmask 261120   ;;  %vm145_vm1 = vcmask 781312  }
  0x28   :  { %185 = vmatprep.subr.bf16.mxu0 %v200_v0  ;;  %v44_v2 = vld [vmem:[#allocation2] sm:$0xff]  ;;  %v45_v3 = vld [vmem:[#allocation2 + $0x8] sm:$0xff]  ;;  %v46_v5 = vld [vmem:[#allocation2 + $0x10] sm:$0xff]  ;;  %s280_s13 = smov [#allocation7]  }
  0x29   :  { %186 = vmatpush3.bf16.msra.mxu0 %v200_v0  ;;  %v48_v4 = vpack.c.bf16 %v45_v3, %v44_v2  ;;  %v47_v6 = vld [vmem:[#allocation2 + $0x18] sm:$0xff]  ;;  %v168_v8 = vld [vmem:[%s352_s2] ss:$0 sm:$0xff]  ;;  %s155_s14 = sshll.u32 %s280_s13, 4  ;;  %s156_s14 = int_to_ptr.vmem [resolvable:$true] %s155_s14 }
  0x2a   :  { %187 = vmatprep.subr.bf16.mxu0 %v201_v1  ;;  %v49_v7 = vpack.c.bf16 %v47_v6, %v46_v5  ;;  %s246_s2 = scalar_lea.vmem %s156_s14, 256  ;;  %p251_p3 = scmp.lt.s32.totalorder %s156_s14, %s156_s14 }
  0x2b   :  { %189 = vmatprep.mubr.msk.bf16.mxu0 %vm73_vm0, %v48_v4  ;;  %p247_p2 = scmp.ne.s32.totalorder %s156_s14, %s246_s2  ;;  %p252_p4 = scmp.lt.s32.totalorder %s246_s2, %s246_s2 }
  0x2d   :  { %188 = vmatpush3.bf16.msra.mxu0 %v201_v1  ;;  %p253_p5 = por %p252_p4, %p251_p3 }
  0x2f   :  { %p254_p6 = pnand %p253_p5, %p247_p2 }
  0x30   :  { %190 = vmatmul.mubr.msk.bf16.vlgmr.msra.gmra.mrb[0].mxu0 %vm73_vm0, %v49_v7 }
 0x103   :  { %v191_v9 = vpop.f32.mrb[0].mxu0 }
 0x104   :  { %v123_v10 = vadd.f32 %v191_v9, %v168_v8  ;;  %v114_v11 = vpop.f32.mrb[1].mxu0 }
 0x105   :  { %v115_v12 = vadd.f32 %v168_v8, %v114_v11  ;;  %v192_v13 = vpop.f32.mrb[2].mxu0 }
 0x106   :  { %v179_v14 = vpack.c.bf16 %v123_v10, %v123_v10  ;;  %v126_v15 = vadd.f32 %v192_v13, %v168_v8  ;;  %v117_v16 = vpop.f32.mrb[3].mxu0 }
 0x107   :  { %v177_v17 = vpack.c.bf16 %v115_v12, %v115_v12  ;;  %v118_v18 = vadd.f32 %v168_v8, %v117_v16 }
 0x108   :  { %148 = vst.msk [vmem:[#allocation7 + $0x8] sm:$0xf] %vm145_vm1, %v179_v14  ;;  %v180_v19 = vpack.c.bf16 %v126_v15, %v126_v15 }
 0x109   :  { %146 = vst.msk [vmem:[#allocation7] sm:$0xf] %vm145_vm1, %v177_v17  ;;  %v178_v20 = vpack.c.bf16 %v118_v18, %v118_v18 }
 0x10a   :  { %149 = vst.msk [vmem:[#allocation7 + $0xc] sm:$0xf] %vm145_vm1, %v180_v19 }
 0x10b   :  { %147 = vst.msk [vmem:[#allocation7 + $0x4] sm:$0xf] %vm145_vm1, %v178_v20 }
 0x10c   :  { %257 = shalt.err (!%p254_p6)
}
 0x10d   :  { %s258_s17 = scalar_lea.hbm %s353_s3, 256 }
 0x10e   :  { %p259_p7 = scmp.ne.s32.totalorder %s353_s3, %s258_s17  ;;  %p262_p8 = scmp.lt.u32.totalorder %s258_s17, %s353_s3 }
 0x110   :  { %p264_p9 = pnand %p262_p8, %p259_p7 }
 0x112   :  { %267 = shalt.err (!%p264_p9)
}
 0x113   :  { %161 = dma.vmem_to_hbm [thread:$0]  %s156_s14, 256, %s353_s3, [#allocation4], %s278_s0, %s278_s0, %s279_s9  }
 0x114   :  { %272 = dma.done.wait [#allocation4], 256  }
 0x115   :  { %273 = vsyncadd [#allocation4], 4294967040 }
 0x116   :  { %165 = vsyncpa [#allocation3], 1 }
 0x117   :  { %166 = vsyncpa [#allocation6], 1 }
 0x118   :  { %167 = vsyncpa [#allocation4], 1 }

</bundles_post_ra>
